<compile_context>
chip_gen: v5e
topology: v5e:2x2
jax: 0.10.0
libtpu: 0.0.40
codegen_flags: <defaults>
</compile_context>

<pallas_src>
import functools

import jax
import jax.numpy as jnp
from jax import lax
from jax.experimental import pallas as pl
from jax.experimental.pallas import tpu as pltpu


def _sgs_kernel(x_ref, w_ref, o_ref):
    """One (batch, pixel-tile) block: y[C_out, T] = W_sum[C_out, C_in] @ x[C_in, T]."""
    # x_ref: (1, C_in, tile_hw), w_ref: (C_out, C_in), o_ref: (1, C_out, tile_hw)
    y = jnp.dot(w_ref[...], x_ref[0], preferred_element_type=jnp.float32)
    o_ref[0] = y.astype(o_ref.dtype)


def grouped_weight_to_dense(w, groups, c_in, c_out):
    """Expand a PyTorch-style grouped 1x1 conv weight [C_out, C_in/g, 1, 1]
    into a dense [C_out, C_in] block-diagonal matrix (zeros off-block)."""
    in_pg = c_in // groups
    out_pg = c_out // groups
    dense = jnp.zeros((c_out, c_in), dtype=w.dtype)
    w2d = w[:, :, 0, 0]  # [C_out, C_in/g]
    for g in range(groups):
        dense = dense.at[g * out_pg:(g + 1) * out_pg,
                         g * in_pg:(g + 1) * in_pg].set(
                             w2d[g * out_pg:(g + 1) * out_pg, :])
    return dense


@functools.partial(jax.jit, static_argnames=("tile_hw", "compute_dtype"))
def soft_grouping_forward(q, w_sum, *, tile_hw=2048, compute_dtype=None):
    """q: NCHW [B, C_in, H, W]; w_sum: fused dense weight [C_out, C_in].
    Returns NCHW [B, C_out, H, W]."""
    B, C_in, H, W = q.shape
    C_out = w_sum.shape[0]
    HW = H * W
    out_dtype = q.dtype

    # NCHW -> [B, C_in, H*W]: pure reshape, no transpose. Pixels land on lanes.
    x = q.reshape(B, C_in, HW)

    # Lane-aligned pixel tile; don't over-pad tiny spatial extents.
    tile = min(tile_hw, ((HW + 127) // 128) * 128)
    HW_pad = ((HW + tile - 1) // tile) * tile
    if HW_pad != HW:
        x = jnp.pad(x, ((0, 0), (0, 0), (0, HW_pad - HW)))

    if compute_dtype is not None:
        x = x.astype(compute_dtype)
        w_sum = w_sum.astype(compute_dtype)
    else:
        w_sum = w_sum.astype(x.dtype)

    itemsize = jnp.dtype(x.dtype).itemsize
    out_itemsize = jnp.dtype(out_dtype).itemsize

    # VMEM budget: double-buffered x/y tiles + (double-buffered) weight + slack.
    vmem_bytes = (2 * tile * C_in * itemsize
                  + 2 * tile * C_out * out_itemsize
                  + 2 * C_out * C_in * itemsize
                  + (4 << 20))
    vmem_bytes = int(min(max(vmem_bytes, 8 << 20), 64 << 20))

    cost = pl.CostEstimate(
        flops=2 * B * HW_pad * C_in * C_out,
        transcendentals=0,
        bytes_accessed=(B * HW_pad * C_in * itemsize
                        + C_out * C_in * itemsize
                        + B * HW_pad * C_out * out_itemsize))

    grid = (B, HW_pad // tile)

    y = pl.pallas_call(
        _sgs_kernel,
        out_shape=jax.ShapeDtypeStruct((B, C_out, HW_pad), out_dtype),
        grid_spec=pltpu.PrefetchScalarGridSpec(
            num_scalar_prefetch=0,
            grid=grid,
            in_specs=[
                pl.BlockSpec((1, C_in, tile), lambda b, i: (b, 0, i)),
                pl.BlockSpec((C_out, C_in), lambda b, i: (0, 0)),
            ],
            out_specs=pl.BlockSpec((1, C_out, tile), lambda b, i: (b, 0, i)),
        ),
        compiler_params=pltpu.CompilerParams(
            dimension_semantics=("parallel", "parallel"),
            vmem_limit_bytes=vmem_bytes),
        cost_estimate=cost,
    )(x, w_sum)

    # Slice off lane padding, reshape back to NCHW (no transpose needed).
    y = y[:, :, :HW]
    return y.reshape(B, C_out, H, W)


def _reference_grouped_conv1x1(q, w, groups):
    """Pure-JAX reference: grouped 1x1 conv, NCHW, weight [C_out, C_in/g, 1, 1]."""
    return lax.conv_general_dilated(
        q, w, window_strides=(1, 1), padding="VALID",
        dimension_numbers=("NCHW", "OIHW", "NCHW"),
        feature_group_count=groups)


if __name__ == "__main__":
    # Small shapes consistent with the module: channels must be divisible by
    # every group count in N.
    B, C_in, H, W = 2, 8, 16, 16
    C_out = 8
    N = (1, 2, 4)

    key = jax.random.PRNGKey(0)
    kq, k1, k2, k3 = jax.random.split(key, 4)

    q = jax.random.normal(kq, (B, C_in, H, W), dtype=jnp.float32)

    # Deterministic parameter init, PyTorch Conv2d weight shapes:
    # [out_channel, in_channel // groups, 1, 1]
    w1 = jax.random.normal(k1, (C_out, C_in // N[0], 1, 1), jnp.float32) * 0.1
    w2 = jax.random.normal(k2, (C_out, C_in // N[1], 1, 1), jnp.float32) * 0.1
    w3 = jax.random.normal(k3, (C_out, C_in // N[2], 1, 1), jnp.float32) * 0.1

    # Fuse the three block-diagonal weights into one dense [C_out, C_in].
    w_sum = (grouped_weight_to_dense(w1, N[0], C_in, C_out)
             + grouped_weight_to_dense(w2, N[1], C_in, C_out)
             + grouped_weight_to_dense(w3, N[2], C_in, C_out))

    out = soft_grouping_forward(q, w_sum)
    out = jax.block_until_ready(out)

    # Correctness check against grouped-conv reference.
    ref = (_reference_grouped_conv1x1(q, w1, N[0])
           + _reference_grouped_conv1x1(q, w2, N[1])
           + _reference_grouped_conv1x1(q, w3, N[2]))
    assert out.shape == (B, C_out, H, W)
    assert jnp.allclose(out, ref, atol=1e-4, rtol=1e-4)

    print("KERNEL_OK")
</pallas_src>

<mosaic_0001>
module attributes {stable_mosaic.version = 11 : i64} {
  func.func @_sgs_kernel(%arg0: i32, %arg1: i32, %arg2: memref<1x8x256xf32, #tpu.memory_space<vmem>>, %arg3: memref<8x8xf32, #tpu.memory_space<vmem>>, %arg4: memref<1x8x256xf32, #tpu.memory_space<vmem>>) attributes {dimension_semantics = [#tpu.dimension_semantics<parallel>, #tpu.dimension_semantics<parallel>], iteration_bounds = array<i64: 2, 1>, scalar_prefetch = 0 : i64, scratch_operands = 0 : i64, tpu.core_type = #tpu.core_type<tc>, window_params = [{transform_indices = @transform_0, window_bounds = array<i64: 1, 8, 256>}, {pipeline_mode = #tpu.pipeline_mode<synchronous>, transform_indices = @transform_1, window_bounds = array<i64: 8, 8>}, {transform_indices = @transform_2, window_bounds = array<i64: 1, 8, 256>}]} {
    %c0 = arith.constant 0 : index
    %c0_0 = arith.constant 0 : index
    %0 = vector.load %arg3[%c0, %c0_0] : memref<8x8xf32, #tpu.memory_space<vmem>>, vector<8x8xf32>
    %c0_1 = arith.constant 0 : index
    %c0_2 = arith.constant 0 : index
    %c0_3 = arith.constant 0 : index
    %1 = vector.load %arg2[%c0_1, %c0_2, %c0_3] : memref<1x8x256xf32, #tpu.memory_space<vmem>>, vector<1x8x256xf32>
    %2 = vector.shape_cast %1 : vector<1x8x256xf32> to vector<8x256xf32>
    %cst = arith.constant dense<0.000000e+00> : vector<8x256xf32>
    %3 = tpu.matmul %0, %2, %cst {dimension_numbers = #tpu.dot_dimension_numbers<[1], [0], [0], [1], [0, 0, 1, 1], [], []>} : vector<8x8xf32>, vector<8x256xf32>, vector<8x256xf32> -> vector<8x256xf32>
    %c0_4 = arith.constant 0 : index
    %c0_5 = arith.constant 0 : index
    %c0_6 = arith.constant 0 : index
    %4 = vector.load %arg4[%c0_4, %c0_5, %c0_6] : memref<1x8x256xf32, #tpu.memory_space<vmem>>, vector<1x8x256xf32>
    %5 = vector.shape_cast %4 : vector<1x8x256xf32> to vector<8x256xf32>
    %6 = vector.shape_cast %3 : vector<8x256xf32> to vector<1x8x256xf32>
    tpu.vector_store %arg4[%c0_4, %c0_5, %c0_6], %6 {strides = array<i32>} : memref<1x8x256xf32, #tpu.memory_space<vmem>>, vector<1x8x256xf32>,
    return
  }
  func.func @transform_0(%arg0: i32, %arg1: i32) -> (i32, i32, i32) {
    %c0_i32 = arith.constant 0 : i32
    %c0_i32_0 = arith.constant 0 : i32
    return %arg0, %c0_i32, %arg1 : i32, i32, i32
  }
  func.func @transform_1(%arg0: i32, %arg1: i32) -> (i32, i32) {
    %c0_i32 = arith.constant 0 : i32
    %c0_i32_0 = arith.constant 0 : i32
    %c0_i32_1 = arith.constant 0 : i32
    return %c0_i32, %c0_i32_0 : i32, i32
  }
  func.func @transform_2(%arg0: i32, %arg1: i32) -> (i32, i32, i32) {
    %c0_i32 = arith.constant 0 : i32
    %c0_i32_0 = arith.constant 0 : i32
    return %arg0, %c0_i32, %arg1 : i32, i32, i32
  }
}

</mosaic_0001>

<bundles_post_ra>
// kernel: soft_grouping_forward.1
= control target key start
LH: loop header
LB: loop body
LE: loop exit
PB: predicated region body
PF: predicated region fallthrough
CT: control target
= control target key end

     0   :  { %s397_s9 = smov 0   ;;  %s399_s10 = smov 0   ;;  %s426_s0 = inlined_call_operand.vmem [shape: f32[2,8,256], index: 0, kind: input, shape index: {}]   ;;  %s427_s1 = inlined_call_operand.vmem [shape: f32[8,8], index: 1, kind: input, shape index: {}]   ;;  %s428_s2 = inlined_call_operand.vmem [shape: f32[2,8,256], index: 2, kind: output, shape index: {}]  }
   0x1   :  { %s401_s11 = smov 0  }
   0x2 LB: > { %s24_s12 = sadd.s32 1, %s376_s10  ;;  %p323_p0 = scmp.ge.s32.totalorder %s380_s11, 1  ;;  %s380_s11 = sphi %s401_s11, %s12_s11   ;;  %s376_s10 = sphi %s399_s10, %s430_s10   ;;  %s372_s9 = sphi %s397_s9, %s429_s9  }
   0x3   : > { %p26_p1 = scmp.ge.s32.totalorder %s24_s12, 2  ;;  %p133_p2 = scmp.lt.s32.totalorder %s380_s11, 3 }
   0x5   : > { %s432_s12 = smov (%p26_p1, %s24_s12), 0  ;;  %p134_p3 = pnand %p323_p0, %p133_p2 }
   0x6   : > { %p164_p4 = scmp.lt.s32.totalorder (!%p134_p3), %s372_s9, 1 }
   0x7   : > { %137 = sbr.rel (%p134_p3) target bundleno = 145 (0x91), region = 28 }
   0xc   : > { %s434_s9 = smov (!%p164_p4, %s372_s9), 1  ;;  %v183_v0 = vld [vmem:[%s427_s1] sm:$0xff]  ;;  %vm186_vm0 = vcmask 64512  }
   0xd   : > { %s332_s13 = sshll.u32 %s434_s9, 4 }
   0xe   : > { %s171_s16 = scalar_lea.vmem %s426_s0, %s332_s13  ;;  %s181_s21 = scalar_lea.vmem %s428_s2, %s332_s13 }
   0xf   : > { %v184_v1 = vld [vmem:[%s171_s16] sm:$0xff]  ;;  %v185_v2 = vld [vmem:[%s171_s16 + $0x8] sm:$0xff] }
  0x10   : > { %205 = vmatpush.msra.mxu0 %v184_v1  ;;  %225 = vmatpush.msra.mxu1 %v185_v2 }
  0x11   : > { %328 = vmatmul.msk.f32.vlgmr.msra.gmra.mxu0 %vm186_vm0, %v183_v0  ;;  %329 = vmatmul.msk.f32.vlgmr.msra.gmra.mxu1 %vm186_vm0, %v183_v0 }
  0x8e   : > { %v207_v3 = vpop.f32.mrf.mxu0  ;;  %v227_v4 = vpop.f32.mrf.mxu1 }
  0x8f   : > { %230 = vst [vmem:[%s181_s21] sm:$0xff] %v207_v3 }
  0x90   : > { %231 = vst [vmem:[%s181_s21 + $0x8] sm:$0xff] %v227_v4 }
  0x91 PF: > { %s12_s11 = sadd.s32 1, %s380_s11   ;;  %s429_s9 = smov %s376_s10 }
  0x92   : > { %p9_p5 = scmp.ge.s32.totalorder %s12_s11, 4   ;;  %s430_s10 = smov %s432_s12 }
  0x94   :  { %11 = sbr.rel (!%p9_p5) target bundleno = 2 (0x2), region = 58 }

</bundles_post_ra>
